<compile_context>
chip_gen: v7x
topology: tpu7x:2x2x1
jax: 0.10.0
libtpu: 0.0.40
codegen_flags: <defaults>
</compile_context>

<pallas_src>
import functools

import jax
import jax.numpy as jnp
from jax.experimental import pallas as pl
from jax.experimental.pallas import tpu as pltpu


def _margin_loss_kernel(lengths_ref, targets_ref, out_ref, *,
                        m_pos, m_neg, lambda_, valid_rows, tile_b):
    x = lengths_ref[...].astype(jnp.float32)            # (TILE_B, C), f32 compute
    tgt = targets_ref[...]                                # (TILE_B, 1) int32

    # One-hot "scatter_(1, targets, 1)" fused into a select via a lane iota.
    class_ids = jax.lax.broadcasted_iota(jnp.int32, x.shape, 1)   # (TILE_B, C)
    row_ids = (pl.program_id(0) * tile_b
               + jax.lax.broadcasted_iota(jnp.int32, x.shape, 0)) # global batch row

    pos = jnp.maximum(m_pos - x, 0.0)
    neg = jnp.maximum(x - m_neg, 0.0)
    loss = jnp.where(class_ids == tgt, pos * pos, lambda_ * (neg * neg))
    # Zero out rows past the real batch size (partial last tile).
    loss = jnp.where(row_ids < valid_rows, loss, 0.0)

    partial = jnp.sum(loss)                               # scalar partial sum
    # Broadcast into a full (1, 8, 128) block -> unmasked store; wrapper reads [0,0].
    out_ref[...] = jnp.full(out_ref.shape, partial, dtype=jnp.float32)


def _choose_tile_b(batch, num_classes):
    """Largest batch-tile (multiple of 8) whose lane-padded, double-buffered
    VMEM footprint stays comfortably inside the scoped VMEM limit on all gens
    (incl. v7x's 32 MiB scoped / 64 MiB physical)."""
    padded_lanes = ((num_classes + 127) // 128) * 128     # VMEM pads C up to 128 lanes
    per_buffer_budget = 8 * 1024 * 1024                   # 8 MiB/buffer -> <=16 MiB w/ 2 bufs
    rows = per_buffer_budget // (padded_lanes * 4)
    rows = min(rows, ((batch + 7) // 8) * 8)
    rows = max(8, (rows // 8) * 8)
    return rows


def margin_loss(lengths, targets, m_pos=0.9, m_neg=0.1, lambda_=0.5,
                size_average=False, tile_b=None):
    """Pallas TPU implementation of MarginLoss.forward.

    lengths: (B, C) float (f32 or bf16 — streamed as-is), targets: (B,) int.
    Returns a scalar f32: sum over all elements, or mean over B*C if
    size_average (matches torch `losses.mean()` / `.sum()`).
    """
    B, C = lengths.shape
    if tile_b is None:
        tile_b = _choose_tile_b(B, C)
    tile_b = max(8, (int(tile_b) // 8) * 8)               # f32 sublane alignment
    num_tiles = (B + tile_b - 1) // tile_b

    targets_2d = targets.astype(jnp.int32).reshape(B, 1)  # lane-broadcastable column

    kernel = functools.partial(
        _margin_loss_kernel,
        m_pos=float(m_pos), m_neg=float(m_neg), lambda_=float(lambda_),
        valid_rows=B, tile_b=tile_b)

    partials = pl.pallas_call(
        kernel,
        out_shape=jax.ShapeDtypeStruct((num_tiles, 8, 128), jnp.float32),
        grid=(num_tiles,),
        in_specs=[
            pl.BlockSpec((tile_b, C), lambda i: (i, 0)),   # batch tile of lengths
            pl.BlockSpec((tile_b, 1), lambda i: (i, 0)),   # matching targets column
        ],
        out_specs=pl.BlockSpec((1, 8, 128), lambda i: (i, 0, 0)),  # one block per tile
        compiler_params=pltpu.CompilerParams(
            dimension_semantics=("parallel",)),            # shards across TCs (v7x)
    )(lengths, targets_2d)

    total = jnp.sum(partials[:, 0, 0])
    if size_average:
        # TODO(synk): matches torch `.mean()` over B*C; some capsule-net repos
        # divide by batch size only — confirm intended semantics.
        total = total / jnp.float32(B * C)
    return total


def _reference(lengths, targets, m_pos, m_neg, lambda_, size_average=False):
    t = jax.nn.one_hot(targets, lengths.shape[1], dtype=jnp.float32)
    x = lengths.astype(jnp.float32)
    pos = jnp.maximum(m_pos - x, 0.0) ** 2
    neg = jnp.maximum(x - m_neg, 0.0) ** 2
    losses = t * pos + lambda_ * (1.0 - t) * neg
    return losses.mean() if size_average else losses.sum()


if __name__ == "__main__":
    key = jax.random.PRNGKey(0)
    k1, k2, k3, k4 = jax.random.split(key, 4)

    m_pos, m_neg, lambda_ = 0.9, 0.1, 0.5

    # Case 1: f32, B not a multiple of the tile -> multi-step grid + row masking.
    B1, C1 = 37, 10
    lengths1 = jax.random.uniform(k1, (B1, C1), dtype=jnp.float32)
    targets1 = jax.random.randint(k2, (B1,), 0, C1, dtype=jnp.int32)
    out1 = jax.block_until_ready(
        margin_loss(lengths1, targets1, m_pos, m_neg, lambda_,
                    size_average=False, tile_b=16))
    ref1 = _reference(lengths1, targets1, m_pos, m_neg, lambda_, size_average=False)
    assert jnp.allclose(out1, ref1, rtol=1e-5, atol=1e-5), (out1, ref1)

    # Case 2: bf16 activations streamed directly (no wrapper upcast), mean reduction.
    B2, C2 = 16, 16
    lengths2 = jax.random.uniform(k3, (B2, C2), dtype=jnp.float32).astype(jnp.bfloat16)
    targets2 = jax.random.randint(k4, (B2,), 0, C2, dtype=jnp.int32)
    out2 = jax.block_until_ready(
        margin_loss(lengths2, targets2, m_pos, m_neg, lambda_, size_average=True))
    ref2 = _reference(lengths2, targets2, m_pos, m_neg, lambda_, size_average=True)
    assert jnp.allclose(out2, ref2, rtol=1e-4, atol=1e-4), (out2, ref2)

    print("KERNEL_OK")
</pallas_src>

<mosaic_0001>
module attributes {stable_mosaic.version = 11 : i64} {
  func.func @_margin_loss_kernel(%arg0: i32, %arg1: memref<16x10xf32, #tpu.memory_space<vmem>>, %arg2: memref<16x1xi32, #tpu.memory_space<vmem>>, %arg3: memref<1x8x128xf32, #tpu.memory_space<vmem>>) attributes {dimension_semantics = [#tpu.dimension_semantics<parallel>], iteration_bounds = array<i64: 3>, scalar_prefetch = 0 : i64, scratch_operands = 0 : i64, tpu.core_type = #tpu.core_type<tc>, window_params = [{transform_indices = @transform_0, window_bounds = array<i64: 16, 10>}, {transform_indices = @transform_1, window_bounds = array<i64: 16, 1>}, {transform_indices = @transform_2, window_bounds = array<i64: 1, 8, 128>}]} {
    %c0 = arith.constant 0 : index
    %c0_0 = arith.constant 0 : index
    %0 = vector.load %arg1[%c0, %c0_0] : memref<16x10xf32, #tpu.memory_space<vmem>>, vector<16x10xf32>
    %c0_1 = arith.constant 0 : index
    %c0_2 = arith.constant 0 : index
    %1 = vector.load %arg2[%c0_1, %c0_2] : memref<16x1xi32, #tpu.memory_space<vmem>>, vector<16x1xi32>
    %2 = tpu.iota {dimensions = array<i32: 1>} : vector<16x10xi32>
    %c16_i32 = arith.constant 16 : i32
    %3 = arith.muli %arg0, %c16_i32 : i32
    %4 = tpu.iota {dimensions = array<i32: 0>} : vector<16x10xi32>
    %5 = vector.broadcast %3 : i32 to vector<16x10xi32>
    %6 = arith.addi %5, %4 : vector<16x10xi32>
    %cst = arith.constant 0.899999976 : f32
    %7 = vector.broadcast %cst : f32 to vector<16x10xf32>
    %8 = arith.subf %7, %0 : vector<16x10xf32>
    %cst_3 = arith.constant 0.000000e+00 : f32
    %9 = vector.broadcast %cst_3 : f32 to vector<16x10xf32>
    %10 = arith.maximumf %8, %9 : vector<16x10xf32>
    %cst_4 = arith.constant 1.000000e-01 : f32
    %11 = vector.broadcast %cst_4 : f32 to vector<16x10xf32>
    %12 = arith.subf %0, %11 : vector<16x10xf32>
    %cst_5 = arith.constant 0.000000e+00 : f32
    %13 = vector.broadcast %cst_5 : f32 to vector<16x10xf32>
    %14 = arith.maximumf %12, %13 : vector<16x10xf32>
    %15 = vector.broadcast %1 : vector<16x1xi32> to vector<16x10xi32>
    %16 = arith.cmpi eq, %2, %15 : vector<16x10xi32>
    %17 = arith.mulf %10, %10 : vector<16x10xf32>
    %18 = arith.mulf %14, %14 : vector<16x10xf32>
    %cst_6 = arith.constant 5.000000e-01 : f32
    %19 = vector.broadcast %cst_6 : f32 to vector<16x10xf32>
    %20 = arith.mulf %19, %18 : vector<16x10xf32>
    %21 = arith.select %16, %17, %20 : vector<16x10xi1>, vector<16x10xf32>
    %c37_i32 = arith.constant 37 : i32
    %22 = vector.broadcast %c37_i32 : i32 to vector<16x10xi32>
    %23 = arith.cmpi slt, %6, %22 : vector<16x10xi32>
    %cst_7 = arith.constant 0.000000e+00 : f32
    %24 = vector.broadcast %cst_7 : f32 to vector<16x10xf32>
    %25 = arith.select %23, %21, %24 : vector<16x10xi1>, vector<16x10xf32>
    %26 = vector.shape_cast %25 : vector<16x10xf32> to vector<1x16x10xf32>
    %cst_8 = arith.constant dense<0.000000e+00> : vector<1xf32>
    %27 = vector.multi_reduction <add>, %26, %cst_8 [1, 2] : vector<1x16x10xf32> to vector<1xf32>
    %28 = vector.shape_cast %27 : vector<1xf32> to vector<1x1x1xf32>
    %29 = vector.extract %28[0, 0, 0] : f32 from vector<1x1x1xf32>
    %30 = vector.broadcast %29 : f32 to vector<1x8x128xf32>
    %c0_9 = arith.constant 0 : index
    %c0_10 = arith.constant 0 : index
    %c0_11 = arith.constant 0 : index
    %31 = vector.load %arg3[%c0_9, %c0_10, %c0_11] : memref<1x8x128xf32, #tpu.memory_space<vmem>>, vector<1x8x128xf32>
    tpu.vector_store %arg3[%c0_9, %c0_10, %c0_11], %30 {strides = array<i32>} : memref<1x8x128xf32, #tpu.memory_space<vmem>>, vector<1x8x128xf32>,
    return
  }
  func.func @transform_0(%arg0: i32) -> (i32, i32) {
    %c0_i32 = arith.constant 0 : i32
    %c0_i32_0 = arith.constant 0 : i32
    return %arg0, %c0_i32 : i32, i32
  }
  func.func @transform_1(%arg0: i32) -> (i32, i32) {
    %c0_i32 = arith.constant 0 : i32
    %c0_i32_0 = arith.constant 0 : i32
    return %arg0, %c0_i32 : i32, i32
  }
  func.func @transform_2(%arg0: i32) -> (i32, i32, i32) {
    %c0_i32 = arith.constant 0 : i32
    %c0_i32_0 = arith.constant 0 : i32
    %c0_i32_1 = arith.constant 0 : i32
    return %arg0, %c0_i32, %c0_i32_0 : i32, i32, i32
  }
}

</mosaic_0001>

<bundles_post_ra>
// kernel: tpu_custom_call.1
= control target key start
LH: loop header
LB: loop body
LE: loop exit
PB: predicated region body
PF: predicated region fallthrough
CT: control target
= control target key end

     0   :  { %7 = vsyncpa [#allocation3], 0  ;;  %s590_s0 = inlined_call_operand.vmem [shape: f32[37,10], index: 0, kind: input, shape index: {}]   ;;  %s591_s1 = inlined_call_operand.vmem [shape: s32[37,1], index: 1, kind: input, shape index: {}]   ;;  %s592_s2 = inlined_call_operand.hbm [shape: f32[3,8,128], index: 2, kind: output, shape index: {}]  }
   0x1   :  { %9 = vsyncpa [#allocation3 + $0x1], 0  ;;  %s487_s9 = smov 0   ;;  %s489_s10 = smov 0  }
   0x2   :  { %s491_s11 = smov 0   ;;  %s493_s12 = smov 0  }
   0x3 LB: > { %s508_s13 = sadd.s32 4294967295, %s468_s12   ;;  %s347_s14 = sadd.s32 4294967294, %s468_s12   ;;  %s468_s12 = sphi %s493_s12, %s598_s12   ;;  %s464_s11 = sphi %s491_s11, %s597_s11   ;;  %s460_s10 = sphi %s489_s10, %s596_s10   ;;  %s456_s9 = sphi %s487_s9, %s595_s9  }
   0x4   : > { %s512_s15 = sadd.s32 1, %s468_s12   ;;  %s74_s16 = sadd.s32 1, %s464_s11 }
   0x5   : > { %s71_s17 = ssub.s32 %s468_s12, %s512_s15  ;;  %p84_p0 = scmp.ne.s32.totalorder %s464_s11, %s460_s10 }
   0x6   : > { %p72_p1 = scmp.eq.s32.totalorder %s71_s17, 0  ;;  %p85_p2 = scmp.eq.s32.totalorder %s508_s13, 2 }
   0x7   : > { %p90_p3 = scmp.ne.s32.totalorder %s460_s10, %s456_s9  ;;  %p91_p4 = scmp.eq.s32.totalorder %s347_s14, 2 }
   0x8   : > { %s523_s18 = scalar_select %p72_p1, %s464_s11, %s74_s16  }
   0x9   : > { %p525_p5 = por %p85_p2, %p84_p0  ;;  %p529_p6 = por %p91_p4, %p90_p3 }
   0xa   : > { %p350_p7 = scmp.ge.s32.totalorder %s468_s12, 1  ;;  %p143_p8 = scmp.lt.s32.totalorder %s468_s12, 4 }
   0xc   : > { %p144_p9 = pnand %p350_p7, %p143_p8 }
   0xd   : > { %s352_s21 = sshll.u32 (!%p144_p9), %s508_s13, 1  ;;  %v470_v0 = vmov (!%p144_p9), 0   ;;  %v210_v6 = vlaneseq (!%p144_p9)  ;;  %s356_s29 = sshll.u32 (!%p144_p9), %s508_s13, 4  ;;  %vm247_vm4 = vcmask (!%p144_p9), 80896  }
   0xe   : > { %147 = sbr.rel (%p144_p9) target bundleno = 382 (0x17e), region = 28  ;;  %405 = vset.pattern.permute.xlu0 (!%p144_p9), %v470_v0  ;;  %p183_p10 = scmp.lt.s32.totalorder (!%p144_p9), %s352_s21, 4  ;;  %v216_v11 = vstv (!%p144_p9), %s356_s29 }
   0xf   : > { %v214_v10 = vshrl.u32 (!%p144_p9), %v210_v6, 7  ;;  %v211_v17 = vand.u32 (!%p144_p9), 127, %v210_v6  ;;  %s175_s30 = sand.u32 (!%p144_p9), 1, %s460_s10   ;;  %s360_s6 = sshll.u32 (!%p144_p9), %s508_s13, 7 }
  0x10   : > { %s351_s3 = sshll.u32 (!%p144_p9), %s175_s30, 3  ;;  %s550_s16 = scalar_lea.hbm (!%p144_p9), %s592_s2, %s360_s6 }
  0x11   : > { %v215_v16 = vadd.s32 (!%p144_p9), 8, %v214_v10  ;;  %v217_v18 = vadd.s32 (!%p144_p9), %v216_v11, %v214_v10  ;;  %s177_s4 = scalar_lea.vmem (!%p144_p9), [#allocation2], %s351_s3  ;;  %s263_s17 = scalar_lea.sflag (!%p144_p9), [#allocation3], %s175_s30 }
  0x12   : > { %s276_s5 = sshll.u32 (!%p144_p9), %s177_s4, 4  ;;  %s471_s13 = smov (!%p144_p9), [#allocation2]   ;;  %s545_s5 = int_to_ptr.vmem [resolvable:$true] %s276_s5 }
  0x13   : > { %v218_v24 = vadd.s32 (!%p144_p9), %v216_v11, %v215_v16  ;;  %vm243_vm1 = vcmp.lt.s32.totalorder (!%p144_p9), %v217_v18, 37 }
  0x15   : > { %s600_s21 = smov (!%p183_p10, %s352_s21), 4  ;;  %vm244_vm2 = vcmp.lt.s32.totalorder %v218_v24, 37 }
  0x16   : > { %s353_s22 = sshll.u32 %s600_s21, 3  ;;  %s406_s21 = scalar_lea.vmem %s545_s5, 128 }
  0x17   : > { %s200_s25 = scalar_lea.vmem %s591_s1, %s353_s22  ;;  %s186_s28 = scalar_lea.vmem %s590_s0, %s353_s22 }
  0x18   : > { %v208_v1 = vld [vmem:[%s200_s25] sm:$0xff]  ;;  %v209_v2 = vld [vmem:[%s200_s25 + $0x8] sm:$0xff]  ;;  %p407_p11 = scmp.ne.s32.totalorder %s545_s5, %s406_s21  ;;  %s410_s22 = sshll.u32 %s471_s13, 4  ;;  %s411_s22 = int_to_ptr.vmem [resolvable:$false] %s410_s22 }
  0x19   : > { %228 = vperm.xlu0 %405, %v208_v1   ;;  %v206_v3 = vld [vmem:[%s186_s28] sm:$0xff]  ;;  %v207_v5 = vld [vmem:[%s186_s28 + $0x8] sm:$0xff]  ;;  %s412_s23 = scalar_lea.vmem %s411_s22, 256  ;;  %p413_p0 = scmp.lt.s32.totalorder %s545_s5, %s411_s22 }
  0x1a   : > { %v357_v4 = vadd.f32 -0.1, %v206_v3  ;;  %v219_v7 = vsub.f32 0.9, %v206_v3  ;;  %v358_v8 = vadd.f32 -0.1, %v207_v5  ;;  %p408_p12 = pnand %p407_p11, %p525_p5  ;;  %p414_p1 = scmp.lt.s32.totalorder %s412_s23, %s406_s21 }
  0x1b   : > { %v220_v12 = vsub.f32 0.9, %v207_v5 }
  0x1c   : > { %v225_v9 = vmax.f32 %v357_v4, 0.0  ;;  %v221_v13 = vmax.f32 %v219_v7, 0.0  ;;  %v226_v14 = vmax.f32 %v358_v8, 0.0  ;;  %p409_p13 = pneg %p408_p12  ;;  %p415_p2 = por %p414_p1, %p413_p0 }
  0x1d   : > { %231 = vperm.xlu0 %405, %v209_v2   ;;  %v222_v19 = vmax.f32 %v220_v12, 0.0 }
  0x1e   : > { %v237_v15 = vmul.f32 %v225_v9, %v225_v9  ;;  %v235_v20 = vmul.f32 %v221_v13, %v221_v13  ;;  %v238_v21 = vmul.f32 %v226_v14, %v226_v14  ;;  %p416_p3 = pnand %p415_p2, %p409_p13 }
  0x1f   : > { %v236_v25 = vmul.f32 %v222_v19, %v222_v19 }
  0x20   : > { %v239_v22 = vmul.f32 0.5, %v237_v15  ;;  %v240_v26 = vmul.f32 0.5, %v238_v21 }
  0x98   : > { %v229_v23 = vpop.permute.xlu0 %228 }
  0x99   : > { %vm233_vm0 = vcmp.eq.s32.totalorder %v211_v17, %v229_v23 }
  0x9a   : > { %v241_v27 = vsel %vm233_vm0, %v235_v20, %v239_v22 }
  0x9b   : > { %v245_v29 = vsel %vm243_vm1, %v241_v27, 0.0 }
  0x9c   : > { %v232_v28 = vpop.permute.xlu0 %231  ;;  %v248_v32 = vsel %vm247_vm4, %v245_v29, 0.0 }
  0x9d   : > { %vm234_vm3 = vcmp.eq.s32.totalorder %v211_v17, %v232_v28 }
  0x9e   : > { %v242_v30 = vsel %vm234_vm3, %v236_v25, %v240_v26 }
  0x9f   : > { %v246_v31 = vsel %vm244_vm2, %v242_v30, 0.0 }
  0xa0   : > { %v249_v33 = vsel %vm247_vm4, %v246_v31, 0.0 }
  0xa1   : > { %v250_v34 = vadd.f32 %v249_v33, %v248_v32 }
  0xa3   : > { %251 = vadd.xlane.f32.xlu1 %v250_v34 }
 0x130   : > { %v252_v35 = vpop.xlane.xlu1 %251 }
 0x131   : > { %v253_v36 = vrot.slane %v252_v35, 4 }
 0x133   : > { %v254_v37 = vadd.f32 %v253_v36, %v252_v35 }
 0x135   : > { %v255_v38 = vrot.slane %v254_v37, 2 }
 0x137   : > { %v256_v39 = vadd.f32 %v255_v38, %v254_v37 }
 0x139   : > { %v257_v40 = vrot.slane %v256_v39, 1 }
 0x13b   : > { %v258_v41 = vadd.f32 %v257_v40, %v256_v39 }
 0x13d   : > { %363 = vpush %v258_v41 }
 0x16e   : > { %s364_s7 = spop %363 }
 0x16f   : > { %v260_v42 = vstv %s364_s7 }
 0x170   : > { %261 = vst [vmem:[%s177_s4] sm:$0xff] %v260_v42 }
 0x171   : > { %419 = shalt.err (!%p416_p3)
}
 0x172   : > { %s420_s24 = scalar_lea.hbm %s550_s16, 128  ;;  %s424_s27 = scalar_lea.hbm %s592_s2, 384 }
 0x173   : > { %p421_p4 = scmp.ne.s32.totalorder %s550_s16, %s420_s24  ;;  %p425_p9 = scmp.lt.u32.totalorder %s550_s16, %s592_s2 }
 0x174   : > { %p426_p10 = scmp.lt.u32.totalorder %s424_s27, %s420_s24  ;;  %p428_p12 = scmp.lt.u32.totalorder %s420_s24, %s550_s16 }
 0x175   : > { %p422_p7 = pnand %p421_p4, %p525_p5 }
 0x176   : > { %p427_p11 = por %p426_p10, %p425_p9 }
 0x177   : > { %p423_p8 = pneg %p422_p7 }
 0x178   : > { %p429_p13 = por %p428_p12, %p427_p11 }
 0x17a   : > { %p430_p0 = pnand %p429_p13, %p423_p8 }
 0x17c   : > { %433 = shalt.err (!%p430_p0)
}
 0x17d   : > { %365 = dma.vmem_to_hbm [thread:$0]  (%p525_p5), %s545_s5, 128, %s550_s16, %s263_s17  }
 0x17e PF: > { %p371_p1 = scmp.ge.s32.totalorder %s468_s12, 2  ;;  %s288_s30 = sand.u32 1, %s456_s9  }
 0x17f   : > { %s289_s3 = scalar_lea.sflag [#allocation3], %s288_s30 }
 0x180   : > { %p368_p2 = pnand %p371_p1, %p529_p6 }
 0x182   : > { %451 = dma.done.wait (!%p368_p2), %s289_s3, 128  }
 0x183   : > { %453 = vsyncadd (!%p368_p2), %s289_s3, 4294967168  ;;  %p12_p3 = scmp.ge.s32.totalorder %s512_s15, 5   ;;  %s595_s9 = smov %s460_s10 }
 0x184   : > { %s596_s10 = smov %s464_s11  ;;  %s597_s11 = smov %s523_s18 }
 0x185   : > { %s598_s12 = smov %s512_s15  ;;  %14 = sbr.rel (!%p12_p3) target bundleno = 3 (0x3), region = 66 }
 0x18c   :  { %294 = vsyncpa [#allocation3], 1 }
 0x18d   :  { %296 = vsyncpa [#allocation3 + $0x1], 1 }

</bundles_post_ra>
